<compile_context>
chip_gen: v7x
topology: tpu7x:2x2x1
jax: 0.10.0
libtpu: 0.0.40
codegen_flags: <defaults>
</compile_context>

<pallas_src>
import functools

import jax
import jax.numpy as jnp
from jax import lax
from jax.experimental import pallas as pl
from jax.experimental.pallas import tpu as pltpu


# ----------------------------------------------------------------------------
# Fused GAT1 -> ReLU -> GAT2 -> VAE kernel
# ----------------------------------------------------------------------------
def _gat_vae_kernel(x_ref, adj_ref,
                    g1w_ref, g1ad_ref, g1as_ref, g1b_ref,
                    g2w_ref, g2ad_ref, g2as_ref, g2b_ref,
                    vw1_ref, vb1_ref, vwml_ref, vbml_ref,
                    vw3_ref, vb3_ref, vw4_ref, vb4_ref,
                    eps_ref,
                    out_ref,
                    h1_ref,
                    *, heads, f1, f2, z_dim):
    neg = jnp.float32(-1e30)
    # int8 adjacency used only as a predicate; cast once (VMEM-local, cheap)
    # and reuse the same vreg-resident mask for both GAT layers.
    mask = adj_ref[...].astype(jnp.float32) > 0.0                     # [N, N]

    def attend(xw, ad_ref, as_blk_ref, nheads, fo):
        # All src-side attention coefficients for every head in ONE small
        # matmul: as_blk is block-structured [nheads, nheads*fo].
        src_rows = lax.dot_general(as_blk_ref[...], xw,
                                   (((1,), (1,)), ((), ())),
                                   preferred_element_type=jnp.float32)  # [nheads, N]
        outs = []
        for h in range(nheads):                      # static, tiny head count
            xw_h = xw[:, h * fo:(h + 1) * fo]        # [N, fo]
            a_d = ad_ref[h:h + 1, :]                 # [1, fo]
            # dst term on the VPU/XLU instead of an M=1 MXU push.
            alpha_dst = jnp.sum(xw_h * a_d, axis=1, keepdims=True)     # [N, 1]
            s = alpha_dst + src_rows[h:h + 1, :]                       # [N, N]
            s = jnp.maximum(s, 0.2 * s)              # LeakyReLU(0.2)
            s = jnp.where(mask, s, neg)              # mask non-edges
            m = jnp.max(s, axis=1, keepdims=True)    # finite (self-loops)
            # Masked entries: exp(-1e30 - m) underflows to exactly 0, so no
            # second mask is needed.  Safe only because add_self_loops=True.
            e = jnp.exp(s - m)
            denom = jnp.sum(e, axis=1, keepdims=True)
            o = jnp.dot(e, xw_h, preferred_element_type=jnp.float32)   # [N, fo]
            # Deferred softmax normalization: scale the small result, not the
            # [N, N] matrix; reciprocal runs on the (otherwise idle) EUP slot.
            outs.append(o * pl.reciprocal(denom, approx=True))
        return outs

    # ---- GAT layer 1 (multi-head, concat) + ReLU --------------------------
    xw1 = jnp.dot(x_ref[...], g1w_ref[...],
                  preferred_element_type=jnp.float32)                  # [N, heads*f1]
    for h, o in enumerate(attend(xw1, g1ad_ref, g1as_ref, heads, f1)):
        h1_ref[:, h * f1:(h + 1) * f1] = o           # direct slice store, no concat
    h1 = jnp.maximum(h1_ref[...] + g1b_ref[...], 0.0)                  # [N, heads*f1]

    # ---- GAT layer 2 (single head) ----------------------------------------
    xw2 = jnp.dot(h1, g2w_ref[...], preferred_element_type=jnp.float32)  # [N, f2]
    gat_out = attend(xw2, g2ad_ref, g2as_ref, 1, f2)[0] + g2b_ref[...]   # [N, f2]

    # ---- VAE ---------------------------------------------------------------
    hv = jnp.maximum(
        jnp.dot(gat_out, vw1_ref[...], preferred_element_type=jnp.float32)
        + vb1_ref[...], 0.0)                                           # [N, 128]
    # fc_mu and fc_logvar fused into one matmul, then sliced.
    mulv = jnp.dot(hv, vwml_ref[...],
                   preferred_element_type=jnp.float32) + vbml_ref[...]  # [N, 2z]
    mu = mulv[:, :z_dim]
    logvar = mulv[:, z_dim:]                         # returned UNclamped (as in torch)
    std = jnp.exp(0.5 * jnp.clip(logvar, -10.0, 10.0))  # clamp only for reparam
    z = mu + eps_ref[...] * std                                        # [N, z]
    h2 = jnp.maximum(
        jnp.dot(z, vw3_ref[...], preferred_element_type=jnp.float32)
        + vb3_ref[...], 0.0)                                           # [N, 128]
    recon = jnp.dot(h2, vw4_ref[...],
                    preferred_element_type=jnp.float32) + vb4_ref[...]  # [N, 64]

    # Packed output slab [gat_out | recon | mu | logvar]: first 128 lanes are
    # an unmasked dense store, the trailing 2*z lanes are one masked store.
    out_ref[...] = jnp.concatenate([gat_out, recon, mu, logvar], axis=1)


def _block_rows(att):
    """[H, F] -> [H, H*F] with row h occupying columns h*F:(h+1)*F (block rows)."""
    h, f = att.shape
    eye = jnp.eye(h, dtype=att.dtype)
    return (eye[:, :, None] * att[:, None, :]).reshape(h, h * f)


# ----------------------------------------------------------------------------
# Full GAT_VAE forward (single fused pallas_call)
# ----------------------------------------------------------------------------
def gat_vae_forward(x, edge_index, edge_attr, params, eps,
                    *, gat_hidden, gat_out, num_heads=2):
    # edge_attr intentionally unused: GATConv(edge_dim=None) ignores edge_attr.
    del edge_attr
    n = x.shape[0]
    z_dim = params["vae_wmu"].shape[1]
    recon_dim = params["vae_w4"].shape[1]

    # Dense int8 adjacency mask adj[dst, src] with self-loops (add_self_loops=True).
    src, dst = edge_index[0], edge_index[1]
    adj = jnp.zeros((n, n), jnp.int8).at[dst, src].set(jnp.int8(1))
    adj = jnp.maximum(adj, jnp.eye(n, dtype=jnp.int8))

    # Tiny host-side parameter prep (done once per call, negligible):
    atts1_blk = _block_rows(params["gat1_att_src"])            # [H, H*F1]
    atts2_blk = params["gat2_att_src"]                         # [1, F2]
    vwml = jnp.concatenate([params["vae_wmu"], params["vae_wlv"]], axis=1)  # [128, 2z]
    vbml = jnp.concatenate([params["vae_bmu"], params["vae_blv"]], axis=1)  # [1, 2z]

    kernel = functools.partial(_gat_vae_kernel, heads=num_heads,
                               f1=gat_hidden, f2=gat_out, z_dim=z_dim)
    vmem = pl.BlockSpec(memory_space=pltpu.MemorySpace.VMEM)
    packed_w = gat_out + recon_dim + 2 * z_dim

    packed = pl.pallas_call(
        kernel,
        out_shape=jax.ShapeDtypeStruct((n, packed_w), jnp.float32),
        in_specs=[vmem] * 19,
        out_specs=vmem,
        scratch_shapes=[pltpu.VMEM((n, num_heads * gat_hidden), jnp.float32)],
        compiler_params=pltpu.CompilerParams(vmem_limit_bytes=32 * 1024 * 1024),
    )(x, adj,
      params["gat1_w"], params["gat1_att_dst"], atts1_blk, params["gat1_b"],
      params["gat2_w"], params["gat2_att_dst"], atts2_blk, params["gat2_b"],
      params["vae_w1"], params["vae_b1"], vwml, vbml,
      params["vae_w3"], params["vae_b3"], params["vae_w4"], params["vae_b4"],
      eps)

    gat_out_feats = packed[:, :gat_out]
    recon = packed[:, gat_out:gat_out + recon_dim]
    mu = packed[:, gat_out + recon_dim:gat_out + recon_dim + z_dim]
    logvar = packed[:, gat_out + recon_dim + z_dim:]
    return recon, mu, logvar, gat_out_feats


def init_params(key, in_channels, gat_hidden, gat_out, z_dim, num_heads=2):
    ks = jax.random.split(key, 16)
    s = 0.1
    p = {
        # GATConv 1: in -> hidden, heads=num_heads (concat)
        "gat1_w": s * jax.random.normal(ks[0], (in_channels, num_heads * gat_hidden), jnp.float32),
        "gat1_att_src": s * jax.random.normal(ks[1], (num_heads, gat_hidden), jnp.float32),
        "gat1_att_dst": s * jax.random.normal(ks[2], (num_heads, gat_hidden), jnp.float32),
        "gat1_b": s * jax.random.normal(ks[3], (1, num_heads * gat_hidden), jnp.float32),
        # GATConv 2: hidden*heads -> out, heads=1
        "gat2_w": s * jax.random.normal(ks[4], (num_heads * gat_hidden, gat_out), jnp.float32),
        "gat2_att_src": s * jax.random.normal(ks[5], (1, gat_out), jnp.float32),
        "gat2_att_dst": s * jax.random.normal(ks[6], (1, gat_out), jnp.float32),
        "gat2_b": s * jax.random.normal(ks[7], (1, gat_out), jnp.float32),
        # VAE (weights stored as [in, out], i.e. already transposed vs torch Linear)
        "vae_w1": s * jax.random.normal(ks[8], (64, 128), jnp.float32),
        "vae_b1": s * jax.random.normal(ks[9], (1, 128), jnp.float32),
        "vae_wmu": s * jax.random.normal(ks[10], (128, z_dim), jnp.float32),
        "vae_bmu": s * jax.random.normal(ks[11], (1, z_dim), jnp.float32),
        "vae_wlv": s * jax.random.normal(ks[12], (128, z_dim), jnp.float32),
        "vae_blv": s * jax.random.normal(ks[13], (1, z_dim), jnp.float32),
        "vae_w3": s * jax.random.normal(ks[14], (z_dim, 128), jnp.float32),
        "vae_b3": jnp.zeros((1, 128), jnp.float32),
        "vae_w4": s * jax.random.normal(ks[15], (128, 64), jnp.float32),
        "vae_b4": jnp.zeros((1, 64), jnp.float32),
    }
    return p


if __name__ == "__main__":
    key = jax.random.PRNGKey(0)
    k_x, k_p, k_eps, k_ea = jax.random.split(key, 4)

    # Small, forward-consistent shapes: VAE requires gat_out == 64.
    N = 16            # nodes
    IN_CH = 8
    GAT_HIDDEN = 16
    GAT_OUT = 64
    Z_DIM = 16
    NUM_HEADS = 2

    x = jax.random.normal(k_x, (N, IN_CH), jnp.float32)

    # Bidirectional ring graph: 2*N directed edges.
    src = jnp.concatenate([jnp.arange(N), (jnp.arange(N) + 1) % N])
    dst = jnp.concatenate([(jnp.arange(N) + 1) % N, jnp.arange(N)])
    edge_index = jnp.stack([src, dst]).astype(jnp.int32)          # [2, 2N]
    edge_attr = jax.random.normal(k_ea, (2 * N, 4), jnp.float32)  # unused by GATConv(edge_dim=None)

    params = init_params(k_p, IN_CH, GAT_HIDDEN, GAT_OUT, Z_DIM, NUM_HEADS)
    eps = jax.random.normal(k_eps, (N, Z_DIM), jnp.float32)       # reparameterization noise

    recon, mu, logvar, gat_out_feats = gat_vae_forward(
        x, edge_index, edge_attr, params, eps,
        gat_hidden=GAT_HIDDEN, gat_out=GAT_OUT, num_heads=NUM_HEADS)

    jax.block_until_ready((recon, mu, logvar, gat_out_feats))
    assert recon.shape == (N, 64)
    assert mu.shape == (N, Z_DIM) and logvar.shape == (N, Z_DIM)
    assert gat_out_feats.shape == (N, GAT_OUT)
    assert bool(jnp.all(jnp.isfinite(recon)))
    assert bool(jnp.all(jnp.isfinite(mu))) and bool(jnp.all(jnp.isfinite(logvar)))
    print("KERNEL_OK")
</pallas_src>

<mosaic_0001>
module attributes {stable_mosaic.version = 11 : i64} {
  func.func @_gat_vae_kernel(%arg0: memref<16x8xf32, #tpu.memory_space<vmem>>, %arg1: memref<16x16xi8, #tpu.memory_space<vmem>>, %arg2: memref<8x32xf32, #tpu.memory_space<vmem>>, %arg3: memref<2x16xf32, #tpu.memory_space<vmem>>, %arg4: memref<2x32xf32, #tpu.memory_space<vmem>>, %arg5: memref<1x32xf32, #tpu.memory_space<vmem>>, %arg6: memref<32x64xf32, #tpu.memory_space<vmem>>, %arg7: memref<1x64xf32, #tpu.memory_space<vmem>>, %arg8: memref<1x64xf32, #tpu.memory_space<vmem>>, %arg9: memref<1x64xf32, #tpu.memory_space<vmem>>, %arg10: memref<64x128xf32, #tpu.memory_space<vmem>>, %arg11: memref<1x128xf32, #tpu.memory_space<vmem>>, %arg12: memref<128x32xf32, #tpu.memory_space<vmem>>, %arg13: memref<1x32xf32, #tpu.memory_space<vmem>>, %arg14: memref<16x128xf32, #tpu.memory_space<vmem>>, %arg15: memref<1x128xf32, #tpu.memory_space<vmem>>, %arg16: memref<128x64xf32, #tpu.memory_space<vmem>>, %arg17: memref<1x64xf32, #tpu.memory_space<vmem>>, %arg18: memref<16x16xf32, #tpu.memory_space<vmem>>, %arg19: memref<16x160xf32, #tpu.memory_space<vmem>>, %arg20: memref<16x32xf32, #tpu.memory_space<vmem>>) attributes {dimension_semantics = [], scalar_prefetch = 0 : i64, scratch_operands = 1 : i64, tpu.core_type = #tpu.core_type<tc>} {
    %c0 = arith.constant 0 : index
    %c0_0 = arith.constant 0 : index
    %0 = vector.load %arg1[%c0, %c0_0] : memref<16x16xi8, #tpu.memory_space<vmem>>, vector<16x16xi8>
    %1 = arith.sitofp %0 : vector<16x16xi8> to vector<16x16xf32>
    %cst = arith.constant 0.000000e+00 : f32
    %2 = vector.broadcast %cst : f32 to vector<16x16xf32>
    %3 = arith.cmpf ogt, %1, %2 : vector<16x16xf32>
    %c0_1 = arith.constant 0 : index
    %c0_2 = arith.constant 0 : index
    %4 = vector.load %arg0[%c0_1, %c0_2] : memref<16x8xf32, #tpu.memory_space<vmem>>, vector<16x8xf32>
    %c0_3 = arith.constant 0 : index
    %c0_4 = arith.constant 0 : index
    %5 = vector.load %arg2[%c0_3, %c0_4] : memref<8x32xf32, #tpu.memory_space<vmem>>, vector<8x32xf32>
    %cst_5 = arith.constant dense<0.000000e+00> : vector<16x32xf32>
    %6 = tpu.matmul %4, %5, %cst_5 {dimension_numbers = #tpu.dot_dimension_numbers<[1], [0], [0], [1], [0, 0, 1, 1], [], []>} : vector<16x8xf32>, vector<8x32xf32>, vector<16x32xf32> -> vector<16x32xf32>
    %c0_6 = arith.constant 0 : index
    %c0_7 = arith.constant 0 : index
    %7 = vector.load %arg4[%c0_6, %c0_7] : memref<2x32xf32, #tpu.memory_space<vmem>>, vector<2x32xf32>
    %cst_8 = arith.constant dense<0.000000e+00> : vector<2x16xf32>
    %8 = tpu.matmul %7, %6, %cst_8 {dimension_numbers = #tpu.dot_dimension_numbers<[1], [1], [0], [0], [0, 0, 1, 0], [], []>} : vector<2x32xf32>, vector<16x32xf32>, vector<2x16xf32> -> vector<2x16xf32>
    %9 = vector.extract_strided_slice %6 {offsets = [0, 0], sizes = [16, 16], strides = [1, 1]} : vector<16x32xf32> to vector<16x16xf32>
    %c0_9 = arith.constant 0 : index
    %c0_10 = arith.constant 0 : index
    %10 = vector.load %arg3[%c0_9, %c0_10] : memref<2x16xf32, #tpu.memory_space<vmem>>, vector<1x16xf32>
    %11 = vector.broadcast %10 : vector<1x16xf32> to vector<16x16xf32>
    %12 = arith.mulf %9, %11 : vector<16x16xf32>
    %cst_11 = arith.constant dense<0.000000e+00> : vector<16xf32>
    %13 = vector.multi_reduction <add>, %12, %cst_11 [1] : vector<16x16xf32> to vector<16xf32>
    %14 = vector.shape_cast %13 : vector<16xf32> to vector<16x1xf32>
    %15 = vector.extract_strided_slice %8 {offsets = [0, 0], sizes = [1, 16], strides = [1, 1]} : vector<2x16xf32> to vector<1x16xf32>
    %16 = vector.broadcast %14 : vector<16x1xf32> to vector<16x16xf32>
    %17 = vector.broadcast %15 : vector<1x16xf32> to vector<16x16xf32>
    %18 = arith.addf %16, %17 : vector<16x16xf32>
    %cst_12 = arith.constant 2.000000e-01 : f32
    %19 = vector.broadcast %cst_12 : f32 to vector<16x16xf32>
    %20 = arith.mulf %19, %18 : vector<16x16xf32>
    %21 = arith.maximumf %18, %20 : vector<16x16xf32>
    %cst_13 = arith.constant -1.000000e+30 : f32
    %22 = vector.broadcast %cst_13 : f32 to vector<16x16xf32>
    %23 = arith.select %3, %21, %22 : vector<16x16xi1>, vector<16x16xf32>
    %cst_14 = arith.constant dense<0xFF800000> : vector<16xf32>
    %24 = vector.multi_reduction <maximumf>, %23, %cst_14 [1] : vector<16x16xf32> to vector<16xf32>
    %25 = vector.shape_cast %24 : vector<16xf32> to vector<16x1xf32>
    %26 = vector.broadcast %25 : vector<16x1xf32> to vector<16x16xf32>
    %27 = arith.subf %23, %26 : vector<16x16xf32>
    %28 = math.exp %27 : vector<16x16xf32>
    %cst_15 = arith.constant dense<0.000000e+00> : vector<16xf32>
    %29 = vector.multi_reduction <add>, %28, %cst_15 [1] : vector<16x16xf32> to vector<16xf32>
    %30 = vector.shape_cast %29 : vector<16xf32> to vector<16x1xf32>
    %cst_16 = arith.constant dense<0.000000e+00> : vector<16x16xf32>
    %31 = tpu.matmul %28, %9, %cst_16 {dimension_numbers = #tpu.dot_dimension_numbers<[1], [0], [0], [1], [0, 0, 1, 1], [], []>} : vector<16x16xf32>, vector<16x16xf32>, vector<16x16xf32> -> vector<16x16xf32>
    %32 = tpu.reciprocal %30 {approx = true} : vector<16x1xf32> -> vector<16x1xf32>
    %33 = vector.broadcast %32 : vector<16x1xf32> to vector<16x16xf32>
    %34 = arith.mulf %31, %33 : vector<16x16xf32>
    %35 = vector.extract_strided_slice %6 {offsets = [0, 16], sizes = [16, 16], strides = [1, 1]} : vector<16x32xf32> to vector<16x16xf32>
    %c1 = arith.constant 1 : index
    %c0_17 = arith.constant 0 : index
    %36 = vector.load %arg3[%c1, %c0_17] : memref<2x16xf32, #tpu.memory_space<vmem>>, vector<1x16xf32>
    %37 = vector.broadcast %36 : vector<1x16xf32> to vector<16x16xf32>
    %38 = arith.mulf %35, %37 : vector<16x16xf32>
    %cst_18 = arith.constant dense<0.000000e+00> : vector<16xf32>
    %39 = vector.multi_reduction <add>, %38, %cst_18 [1] : vector<16x16xf32> to vector<16xf32>
    %40 = vector.shape_cast %39 : vector<16xf32> to vector<16x1xf32>
    %41 = vector.extract_strided_slice %8 {offsets = [1, 0], sizes = [1, 16], strides = [1, 1]} : vector<2x16xf32> to vector<1x16xf32>
    %42 = vector.broadcast %40 : vector<16x1xf32> to vector<16x16xf32>
    %43 = vector.broadcast %41 : vector<1x16xf32> to vector<16x16xf32>
    %44 = arith.addf %42, %43 : vector<16x16xf32>
    %cst_19 = arith.constant 2.000000e-01 : f32
    %45 = vector.broadcast %cst_19 : f32 to vector<16x16xf32>
    %46 = arith.mulf %45, %44 : vector<16x16xf32>
    %47 = arith.maximumf %44, %46 : vector<16x16xf32>
    %cst_20 = arith.constant -1.000000e+30 : f32
    %48 = vector.broadcast %cst_20 : f32 to vector<16x16xf32>
    %49 = arith.select %3, %47, %48 : vector<16x16xi1>, vector<16x16xf32>
    %cst_21 = arith.constant dense<0xFF800000> : vector<16xf32>
    %50 = vector.multi_reduction <maximumf>, %49, %cst_21 [1] : vector<16x16xf32> to vector<16xf32>
    %51 = vector.shape_cast %50 : vector<16xf32> to vector<16x1xf32>
    %52 = vector.broadcast %51 : vector<16x1xf32> to vector<16x16xf32>
    %53 = arith.subf %49, %52 : vector<16x16xf32>
    %54 = math.exp %53 : vector<16x16xf32>
    %cst_22 = arith.constant dense<0.000000e+00> : vector<16xf32>
    %55 = vector.multi_reduction <add>, %54, %cst_22 [1] : vector<16x16xf32> to vector<16xf32>
    %56 = vector.shape_cast %55 : vector<16xf32> to vector<16x1xf32>
    %cst_23 = arith.constant dense<0.000000e+00> : vector<16x16xf32>
    %57 = tpu.matmul %54, %35, %cst_23 {dimension_numbers = #tpu.dot_dimension_numbers<[1], [0], [0], [1], [0, 0, 1, 1], [], []>} : vector<16x16xf32>, vector<16x16xf32>, vector<16x16xf32> -> vector<16x16xf32>
    %58 = tpu.reciprocal %56 {approx = true} : vector<16x1xf32> -> vector<16x1xf32>
    %59 = vector.broadcast %58 : vector<16x1xf32> to vector<16x16xf32>
    %60 = arith.mulf %57, %59 : vector<16x16xf32>
    %c0_24 = arith.constant 0 : index
    %c0_25 = arith.constant 0 : index
    %61 = vector.load %arg20[%c0_24, %c0_25] : memref<16x32xf32, #tpu.memory_space<vmem>>, vector<16x16xf32>
    tpu.vector_store %arg20[%c0_24, %c0_25], %34 {strides = array<i32>} : memref<16x32xf32, #tpu.memory_space<vmem>>, vector<16x16xf32>,
    %c0_26 = arith.constant 0 : index
    %c16 = arith.constant 16 : index
    %62 = vector.load %arg20[%c0_26, %c16] : memref<16x32xf32, #tpu.memory_space<vmem>>, vector<16x16xf32>
    tpu.vector_store %arg20[%c0_26, %c16], %60 {strides = array<i32>} : memref<16x32xf32, #tpu.memory_space<vmem>>, vector<16x16xf32>,
    %c0_27 = arith.constant 0 : index
    %c0_28 = arith.constant 0 : index
    %63 = vector.load %arg20[%c0_27, %c0_28] : memref<16x32xf32, #tpu.memory_space<vmem>>, vector<16x32xf32>
    %c0_29 = arith.constant 0 : index
    %c0_30 = arith.constant 0 : index
    %64 = vector.load %arg5[%c0_29, %c0_30] : memref<1x32xf32, #tpu.memory_space<vmem>>, vector<1x32xf32>
    %65 = vector.broadcast %64 : vector<1x32xf32> to vector<16x32xf32>
    %66 = arith.addf %63, %65 : vector<16x32xf32>
    %cst_31 = arith.constant 0.000000e+00 : f32
    %67 = vector.broadcast %cst_31 : f32 to vector<16x32xf32>
    %68 = arith.maximumf %66, %67 : vector<16x32xf32>
    %c0_32 = arith.constant 0 : index
    %c0_33 = arith.constant 0 : index
    %69 = vector.load %arg6[%c0_32, %c0_33] : memref<32x64xf32, #tpu.memory_space<vmem>>, vector<32x64xf32>
    %cst_34 = arith.constant dense<0.000000e+00> : vector<16x64xf32>
    %70 = tpu.matmul %68, %69, %cst_34 {dimension_numbers = #tpu.dot_dimension_numbers<[1], [0], [0], [1], [0, 0, 1, 1], [], []>} : vector<16x32xf32>, vector<32x64xf32>, vector<16x64xf32> -> vector<16x64xf32>
    %c0_35 = arith.constant 0 : index
    %c0_36 = arith.constant 0 : index
    %71 = vector.load %arg8[%c0_35, %c0_36] : memref<1x64xf32, #tpu.memory_space<vmem>>, vector<1x64xf32>
    %cst_37 = arith.constant dense<0.000000e+00> : vector<1x16xf32>
    %72 = tpu.matmul %71, %70, %cst_37 {dimension_numbers = #tpu.dot_dimension_numbers<[1], [1], [0], [0], [0, 0, 1, 0], [], []>} : vector<1x64xf32>, vector<16x64xf32>, vector<1x16xf32> -> vector<1x16xf32>
    %c0_38 = arith.constant 0 : index
    %c0_39 = arith.constant 0 : index
    %73 = vector.load %arg7[%c0_38, %c0_39] : memref<1x64xf32, #tpu.memory_space<vmem>>, vector<1x64xf32>
    %74 = vector.broadcast %73 : vector<1x64xf32> to vector<16x64xf32>
    %75 = arith.mulf %70, %74 : vector<16x64xf32>
    %cst_40 = arith.constant dense<0.000000e+00> : vector<16xf32>
    %76 = vector.multi_reduction <add>, %75, %cst_40 [1] : vector<16x64xf32> to vector<16xf32>
    %77 = vector.shape_cast %76 : vector<16xf32> to vector<16x1xf32>
    %78 = vector.broadcast %77 : vector<16x1xf32> to vector<16x16xf32>
    %79 = vector.broadcast %72 : vector<1x16xf32> to vector<16x16xf32>
    %80 = arith.addf %78, %79 : vector<16x16xf32>
    %cst_41 = arith.constant 2.000000e-01 : f32
    %81 = vector.broadcast %cst_41 : f32 to vector<16x16xf32>
    %82 = arith.mulf %81, %80 : vector<16x16xf32>
    %83 = arith.maximumf %80, %82 : vector<16x16xf32>
    %cst_42 = arith.constant -1.000000e+30 : f32
    %84 = vector.broadcast %cst_42 : f32 to vector<16x16xf32>
    %85 = arith.select %3, %83, %84 : vector<16x16xi1>, vector<16x16xf32>
    %cst_43 = arith.constant dense<0xFF800000> : vector<16xf32>
    %86 = vector.multi_reduction <maximumf>, %85, %cst_43 [1] : vector<16x16xf32> to vector<16xf32>
    %87 = vector.shape_cast %86 : vector<16xf32> to vector<16x1xf32>
    %88 = vector.broadcast %87 : vector<16x1xf32> to vector<16x16xf32>
    %89 = arith.subf %85, %88 : vector<16x16xf32>
    %90 = math.exp %89 : vector<16x16xf32>
    %cst_44 = arith.constant dense<0.000000e+00> : vector<16xf32>
    %91 = vector.multi_reduction <add>, %90, %cst_44 [1] : vector<16x16xf32> to vector<16xf32>
    %92 = vector.shape_cast %91 : vector<16xf32> to vector<16x1xf32>
    %cst_45 = arith.constant dense<0.000000e+00> : vector<16x64xf32>
    %93 = tpu.matmul %90, %70, %cst_45 {dimension_numbers = #tpu.dot_dimension_numbers<[1], [0], [0], [1], [0, 0, 1, 1], [], []>} : vector<16x16xf32>, vector<16x64xf32>, vector<16x64xf32> -> vector<16x64xf32>
    %94 = tpu.reciprocal %92 {approx = true} : vector<16x1xf32> -> vector<16x1xf32>
    %95 = vector.broadcast %94 : vector<16x1xf32> to vector<16x64xf32>
    %96 = arith.mulf %93, %95 : vector<16x64xf32>
    %c0_46 = arith.constant 0 : index
    %c0_47 = arith.constant 0 : index
    %97 = vector.load %arg9[%c0_46, %c0_47] : memref<1x64xf32, #tpu.memory_space<vmem>>, vector<1x64xf32>
    %98 = vector.broadcast %97 : vector<1x64xf32> to vector<16x64xf32>
    %99 = arith.addf %96, %98 : vector<16x64xf32>
    %c0_48 = arith.constant 0 : index
    %c0_49 = arith.constant 0 : index
    %100 = vector.load %arg10[%c0_48, %c0_49] : memref<64x128xf32, #tpu.memory_space<vmem>>, vector<64x128xf32>
    %cst_50 = arith.constant dense<0.000000e+00> : vector<16x128xf32>
    %101 = tpu.matmul %99, %100, %cst_50 {dimension_numbers = #tpu.dot_dimension_numbers<[1], [0], [0], [1], [0, 0, 1, 1], [], []>} : vector<16x64xf32>, vector<64x128xf32>, vector<16x128xf32> -> vector<16x128xf32>
    %c0_51 = arith.constant 0 : index
    %c0_52 = arith.constant 0 : index
    %102 = vector.load %arg11[%c0_51, %c0_52] : memref<1x128xf32, #tpu.memory_space<vmem>>, vector<1x128xf32>
    %103 = vector.broadcast %102 : vector<1x128xf32> to vector<16x128xf32>
    %104 = arith.addf %101, %103 : vector<16x128xf32>
    %cst_53 = arith.constant 0.000000e+00 : f32
    %105 = vector.broadcast %cst_53 : f32 to vector<16x128xf32>
    %106 = arith.maximumf %104, %105 : vector<16x128xf32>
    %c0_54 = arith.constant 0 : index
    %c0_55 = arith.constant 0 : index
    %107 = vector.load %arg12[%c0_54, %c0_55] : memref<128x32xf32, #tpu.memory_space<vmem>>, vector<128x32xf32>
    %cst_56 = arith.constant dense<0.000000e+00> : vector<16x32xf32>
    %108 = tpu.matmul %106, %107, %cst_56 {dimension_numbers = #tpu.dot_dimension_numbers<[1], [0], [0], [1], [0, 0, 1, 1], [], []>} : vector<16x128xf32>, vector<128x32xf32>, vector<16x32xf32> -> vector<16x32xf32>
    %c0_57 = arith.constant 0 : index
    %c0_58 = arith.constant 0 : index
    %109 = vector.load %arg13[%c0_57, %c0_58] : memref<1x32xf32, #tpu.memory_space<vmem>>, vector<1x32xf32>
    %110 = vector.broadcast %109 : vector<1x32xf32> to vector<16x32xf32>
    %111 = arith.addf %108, %110 : vector<16x32xf32>
    %112 = vector.extract_strided_slice %111 {offsets = [0, 0], sizes = [16, 16], strides = [1, 1]} : vector<16x32xf32> to vector<16x16xf32>
    %113 = vector.extract_strided_slice %111 {offsets = [0, 16], sizes = [16, 16], strides = [1, 1]} : vector<16x32xf32> to vector<16x16xf32>
    %cst_59 = arith.constant -1.000000e+01 : f32
    %cst_60 = arith.constant 1.000000e+01 : f32
    %114 = vector.broadcast %cst_59 : f32 to vector<16x16xf32>
    %115 = arith.maximumf %114, %113 : vector<16x16xf32>
    %116 = vector.broadcast %cst_60 : f32 to vector<16x16xf32>
    %117 = arith.minimumf %116, %115 : vector<16x16xf32>
    %cst_61 = arith.constant 5.000000e-01 : f32
    %118 = vector.broadcast %cst_61 : f32 to vector<16x16xf32>
    %119 = arith.mulf %118, %117 : vector<16x16xf32>
    %120 = math.exp %119 : vector<16x16xf32>
    %c0_62 = arith.constant 0 : index
    %c0_63 = arith.constant 0 : index
    %121 = vector.load %arg18[%c0_62, %c0_63] : memref<16x16xf32, #tpu.memory_space<vmem>>, vector<16x16xf32>
    %122 = arith.mulf %121, %120 : vector<16x16xf32>
    %123 = arith.addf %112, %122 : vector<16x16xf32>
    %c0_64 = arith.constant 0 : index
    %c0_65 = arith.constant 0 : index
    %124 = vector.load %arg14[%c0_64, %c0_65] : memref<16x128xf32, #tpu.memory_space<vmem>>, vector<16x128xf32>
    %cst_66 = arith.constant dense<0.000000e+00> : vector<16x128xf32>
    %125 = tpu.matmul %123, %124, %cst_66 {dimension_numbers = #tpu.dot_dimension_numbers<[1], [0], [0], [1], [0, 0, 1, 1], [], []>} : vector<16x16xf32>, vector<16x128xf32>, vector<16x128xf32> -> vector<16x128xf32>
    %c0_67 = arith.constant 0 : index
    %c0_68 = arith.constant 0 : index
    %126 = vector.load %arg15[%c0_67, %c0_68] : memref<1x128xf32, #tpu.memory_space<vmem>>, vector<1x128xf32>
    %127 = vector.broadcast %126 : vector<1x128xf32> to vector<16x128xf32>
    %128 = arith.addf %125, %127 : vector<16x128xf32>
    %cst_69 = arith.constant 0.000000e+00 : f32
    %129 = vector.broadcast %cst_69 : f32 to vector<16x128xf32>
    %130 = arith.maximumf %128, %129 : vector<16x128xf32>
    %c0_70 = arith.constant 0 : index
    %c0_71 = arith.constant 0 : index
    %131 = vector.load %arg16[%c0_70, %c0_71] : memref<128x64xf32, #tpu.memory_space<vmem>>, vector<128x64xf32>
    %cst_72 = arith.constant dense<0.000000e+00> : vector<16x64xf32>
    %132 = tpu.matmul %130, %131, %cst_72 {dimension_numbers = #tpu.dot_dimension_numbers<[1], [0], [0], [1], [0, 0, 1, 1], [], []>} : vector<16x128xf32>, vector<128x64xf32>, vector<16x64xf32> -> vector<16x64xf32>
    %c0_73 = arith.constant 0 : index
    %c0_74 = arith.constant 0 : index
    %133 = vector.load %arg17[%c0_73, %c0_74] : memref<1x64xf32, #tpu.memory_space<vmem>>, vector<1x64xf32>
    %134 = vector.broadcast %133 : vector<1x64xf32> to vector<16x64xf32>
    %135 = arith.addf %132, %134 : vector<16x64xf32>
    %136 = tpu.concatenate %99, %135, %112, %113 in 1 : vector<16x64xf32>, vector<16x64xf32>, vector<16x16xf32>, vector<16x16xf32> -> vector<16x160xf32>
    %c0_75 = arith.constant 0 : index
    %c0_76 = arith.constant 0 : index
    %137 = vector.load %arg19[%c0_75, %c0_76] : memref<16x160xf32, #tpu.memory_space<vmem>>, vector<16x160xf32>
    tpu.vector_store %arg19[%c0_75, %c0_76], %136 {strides = array<i32>} : memref<16x160xf32, #tpu.memory_space<vmem>>, vector<16x160xf32>,
    return
  }
}

</mosaic_0001>

<bundles_post_ra>
// kernel: tpu_custom_call.1
= control target key start
LH: loop header
LB: loop body
LE: loop exit
PB: predicated region body
PF: predicated region fallthrough
CT: control target
= control target key end

     0   :  { %s2134_s0 = inlined_call_operand.vmem [shape: f32[16,8], index: 0, kind: input, shape index: {}]   ;;  %s2135_s1 = inlined_call_operand.vmem [shape: s8[16,16], index: 1, kind: input, shape index: {}]   ;;  %s2136_s2 = inlined_call_operand.vmem [shape: f32[8,32], index: 2, kind: input, shape index: {}]   ;;  %s2137_s3 = inlined_call_operand.vmem [shape: f32[2,16], index: 3, kind: input, shape index: {}]   ;;  %s2138_s4 = inlined_call_operand.vmem [shape: f32[2,32], index: 4, kind: input, shape index: {}]   ;;  %s2139_s5 = inlined_call_operand.vmem [shape: f32[1,32], index: 5, kind: input, shape index: {}]   ;;  %s2140_s6 = inlined_call_operand.vmem [shape: f32[32,64], index: 6, kind: input, shape index: {}]   ;;  %s2141_s7 = inlined_call_operand.vmem [shape: f32[1,64], index: 7, kind: input, shape index: {}]   ;;  %s2142_s8 = inlined_call_operand.vmem [shape: f32[1,64], index: 8, kind: input, shape index: {}]   ;;  %s2143_s9 = inlined_call_operand.vmem [shape: f32[1,64], index: 9, kind: input, shape index: {}]   ;;  %s2144_s10 = inlined_call_operand.vmem [shape: f32[64,128], index: 10, kind: input, shape index: {}]   ;;  %s2145_s11 = inlined_call_operand.vmem [shape: f32[1,128], index: 11, kind: input, shape index: {}]   ;;  %s2146_s12 = inlined_call_operand.vmem [shape: f32[128,32], index: 12, kind: input, shape index: {}]   ;;  %s2147_s13 = inlined_call_operand.vmem [shape: f32[1,32], index: 13, kind: input, shape index: {}]   ;;  %s2148_s14 = inlined_call_operand.vmem [shape: f32[16,128], index: 14, kind: input, shape index: {}]   ;;  %s2149_s15 = inlined_call_operand.vmem [shape: f32[1,128], index: 15, kind: input, shape index: {}]   ;;  %s2150_s16 = inlined_call_operand.vmem [shape: f32[128,64], index: 16, kind: input, shape index: {}]   ;;  %s2151_s17 = inlined_call_operand.vmem [shape: f32[1,64], index: 17, kind: input, shape index: {}]   ;;  %s2152_s18 = inlined_call_operand.vmem [shape: f32[16,16], index: 18, kind: input, shape index: {}]   ;;  %s2153_s19 = inlined_call_operand.hbm [shape: f32[16,160], index: 19, kind: output, shape index: {}]  }
   0x1   :  { %2157 = sst [smem:[#allocation6_spill]] %s2134_s0 }
   0x2   :  { %2158 = sst [smem:[#allocation7_spill]] %s2135_s1 }
   0x3   :  { %2159 = sst [smem:[#allocation8_spill]] %s2136_s2 }
   0x4   :  { %2160 = sst [smem:[#allocation9_spill]] %s2137_s3 }
   0x5   :  { %2161 = sst [smem:[#allocation10_spill]] %s2148_s14 }
   0x6   :  { %s2162_s20 = sld [smem:[#allocation8_spill]]  ;;  %s2163_s14 = sld [smem:[#allocation6_spill]]  ;;  %vm74_vm0 = vcmask 64512  }
   0x7   :  { %s2164_s25 = sld [smem:[#allocation9_spill]] }
   0xc   :  { %v73_v0 = vld [vmem:[%s2162_s20] sm:$0xff]  ;;  %v72_v2 = vld [vmem:[%s2163_s14 + $0x8] sm:$0xff] }
   0xd   :  { %v71_v1 = vld [vmem:[%s2163_s14] sm:$0xff]  ;;  %1395 = vmatprep.subr.mxu0 %v73_v0 }
   0xe   :  { %1397 = vmatprep.mubr.msk.f32.mxu0 %vm74_vm0, %v71_v1  ;;  %v1291_v3 = vld [vmem:[%s2164_s25 + $0x1] ss:$0 sm:$0xff] }
   0xf   :  { %24 = vsyncpa [#allocation4], 0  ;;  %1396 = vmatpush3.msra.mxu0 %v73_v0  ;;  %s1719_s3 = smov 16   ;;  %v1720_v4 = vmov 0.0|0.0   ;;  %vm1721_vm1 = vmmov 0   ;;  %v1722_v5 = vmov 0.0   ;;  %v251_v23 = vlaneseq }
  0x10   :  { %372 = vrot.lane.b32.xlu0 %v1291_v3, %s1719_s3  ;;  %1398 = vmatmul.mubr.msk.f32.vlgmr.msra.gmra.mrb[0].mxu0 %vm74_vm0, %v72_v2  ;;  %vm157_vm2 = vcmask 261120   ;;  %s1723_s14 = smov 112   ;;  %v156_v13 = vld [vmem:[%s2138_s4] sm:$0x3]  ;;  %vm244_vm4 = vcmask 130048   ;;  %s2165_s30 = sld [smem:[#allocation7_spill]] }
  0x11   :  { %1542 = vmatprep.subr.bf16.mxu1 %v1720_v4  ;;  %1404 = vmatprep.mubr.msk.f32.mxu1 %vm1721_vm1, %v1722_v5  ;;  %vm1544_vm3 = vmpackc.low %vm157_vm2, %vm157_vm2  ;;  %v1288_v14 = vld [vmem:[%s2164_s25] ss:$0 sm:$0xff]  ;;  %v1870_v24 = vshrl.u32 %v251_v23, 7  ;;  %vm522_vm7 = vcmask 261248   ;;  %vm624_vm8 = vcmask 523264  }
  0x12   :  { %vm1564_vm9 = vmpackc.low %vm624_vm8, %vm624_vm8 }
  0x13   :  { %v253_v26 = vsub.s32 0, %v1870_v24  ;;  %v393_v46 = vsub.s32 1, %v1870_v24 }
  0x16   :  { %v1315_v25 = vld [vmem:[%s2165_s30] sm:$0xf]  }
  0x17   :  { %v1317_v27 = vunpack.c.1.s8 %v1315_v25  ;;  %v1316_v28 = vunpack.c.0.s8 %v1315_v25 }
  0x19   :  { %v1878_v34 = vcvt.s32.f32 %v1317_v27  ;;  %v1880_v35 = vcvt.s32.f32 %v1316_v28 }
  0x1b   :  { %vm70_vm5 = vcmp.gt.f32.partialorder %v1878_v34, 0.0  ;;  %vm69_vm6 = vcmp.gt.f32.partialorder %v1880_v35, 0.0 }
  0x82   :  { %v373_v6 = vpop.permute.xlu0 %372 }
  0xe3   :  { %v1843_v7 = vpop.f32.mrb[0].mxu0 }
  0xe4   :  { %v1845_v8 = vpop.f32.mrb[1].mxu0  ;;  %v376_v9 = vmul.f32 %v1843_v7, %v373_v6  ;;  %v243_v15 = vmul.f32 %v1843_v7, %v1288_v14 }
  0xe5   :  { %v375_v10 = vmul.f32 %v373_v6, %v1845_v8  ;;  %v1543_v11 = vpack.c.bf16 %v1843_v7, %v1845_v8  ;;  %v1662_v12 = vpack.i.bf16 %v1843_v7, %v1845_v8  ;;  %v242_v17 = vmul.f32 %v1288_v14, %v1845_v8 }
  0xe6   :  { %381 = vrot.lane.b32.xlu1 %v376_v9, %s1723_s14  ;;  %v248_v16 = vsel %vm244_vm4, %v243_v15, 0.0 }
  0xe7   :  { %379 = vrot.lane.b32.xlu0 %v375_v10, %s1723_s14  ;;  %1545 = vmatpush3.bf16.xpose.msk.msra.mxu1 %vm1544_vm3, %v1543_v11  ;;  %v245_v18 = vsel %vm244_vm4, %v242_v17, 0.0 }
  0xe8   :  { %1547 = vmatprep.subr.bf16.mxu0 %v1543_v11 }
  0xe9   :  { %1549 = vmatpush3.bf16.msra.mxu0 %v1543_v11 }
  0xee   :  { %1405 = vmatmul.mubr.msk.f32.vlgmr.msra.gmra.mrb[0].mxu1 %vm157_vm2, %v156_v13 }
 0x106   :  { %249 = vadd.xlane.f32.xlu0 %v248_v16 }
 0x10a   :  { %246 = vadd.xlane.f32.xlu1 %v245_v18 }
 0x158   :  { %v382_v19 = vpop.permute.xlu1 %381 }
 0x159   :  { %v380_v20 = vpop.permute.xlu0 %379  ;;  %v388_v21 = vsel %vm244_vm4, %v382_v19, 0.0 }
 0x15a   :  { %389 = vadd.xlane.f32.xlu1 %v388_v21  ;;  %v385_v22 = vsel %vm244_vm4, %v380_v20, 0.0 }
 0x15b   :  { %386 = vadd.xlane.f32.xlu0 %v385_v22 }
 0x193   :  { %v250_v32 = vpop.xlane.xlu0 %249 }
 0x197   :  { %v247_v33 = vpop.xlane.xlu1 %246 }
 0x1c1   :  { %v233_v29 = vpop.f32.mrb[0].mxu1 }
 0x1c2   :  { %v254_v30 = vrot.slane %v233_v29, %v253_v26  ;;  %v1406_v31 = vpop.f32.mrb[1].mxu1  ;;  %v394_v47 = vrot.slane %v233_v29, %v393_v46 }
 0x1c4   :  { %v255_v36 = vadd.f32 %v254_v30, %v247_v33  ;;  %v256_v37 = vadd.f32 %v254_v30, %v250_v32 }
 0x1c6   :  { %v258_v38 = vmul.f32 0.2, %v256_v37  ;;  %v257_v39 = vmul.f32 0.2, %v255_v36 }
 0x1c8   :  { %v260_v40 = vmax.f32 %v256_v37, %v258_v38  ;;  %v259_v41 = vmax.f32 %v255_v36, %v257_v39  ;;  %v538_v36 = vld [vmem:[%s2140_s6] sm:$0xff]  ;;  %v539_v37 = vld [vmem:[%s2140_s6 + $0x8] sm:$0xff]  ;;  %v540_v38 = vld [vmem:[%s2140_s6 + $0x10] sm:$0xff] }
 0x1c9   :  { %v1554_v39 = vpack.c.bf16 %v539_v37, %v538_v36  ;;  %v849_v36 = vld [vmem:[%s2144_s10 + $0x30] sm:$0xff]  ;;  %v850_v37 = vld [vmem:[%s2144_s10 + $0x38] sm:$0xff] }
 0x1ca   :  { %v262_v42 = vsel %vm70_vm5, %v260_v40, -1e+30  ;;  %v261_v43 = vsel %vm69_vm6, %v259_v41, -1e+30  ;;  %v541_v40 = vld [vmem:[%s2140_s6 + $0x18] sm:$0xff]  ;;  %s2166_s6 = sld [smem:[#allocation10_spill]] }
 0x1cb   :  { %v266_v44 = vsel %vm244_vm4, %v262_v42, -inf  ;;  %v263_v45 = vsel %vm244_vm4, %v261_v43, -inf  ;;  %v1558_v41 = vpack.c.bf16 %v541_v40, %v540_v38  ;;  %1555 = vmatprep.subr.bf16.mxu1 %v1554_v39  ;;  %v1582_v38 = vpack.c.bf16 %v850_v37, %v849_v36  ;;  %v942_v40 = vld [vmem:[%s2146_s12 + $0x8] sm:$0xff]  ;;  %v1049_v37 = vld [vmem:[%s2152_s18] sm:$0xff] }
 0x1cc   :  { %267 = vmax.xlane.f32.xlu1 %v266_v44  ;;  %264 = vmax.xlane.f32.xlu0 %v263_v45  ;;  %v1050_v36 = vld [vmem:[%s2152_s18 + $0x8] sm:$0xff] }
 0x1cd   :  { %1557 = vmatpush3.bf16.msra.mxu1 %v1554_v39  ;;  %v941_v39 = vld [vmem:[%s2146_s12] sm:$0xff] }
 0x1ce   :  { %1559 = vmatprep.subr.bf16.mxu1 %v1558_v41 }
 0x1d1   :  { %1561 = vmatpush3.bf16.msra.mxu1 %v1558_v41  ;;  %v943_v41 = vld [vmem:[%s2146_s12 + $0x10] sm:$0xff] }
 0x1d2   :  { %1562 = vmatprep.subr.bf16.mxu1 %v1720_v4 }
 0x1e7   :  { %v390_v48 = vpop.xlane.xlu1 %389 }
 0x1e8   :  { %v396_v49 = vadd.f32 %v394_v47, %v390_v48  ;;  %v387_v50 = vpop.xlane.xlu0 %386 }
 0x1e9   :  { %v395_v51 = vadd.f32 %v394_v47, %v387_v50  ;;  %v1294_v50 = vld [vmem:[%s2139_s5] ss:$0 sm:$0xff] }
 0x1ea   :  { %v398_v52 = vmul.f32 0.2, %v396_v49 }
 0x1eb   :  { %v397_v53 = vmul.f32 0.2, %v395_v51 }
 0x1ec   :  { %v400_v54 = vmax.f32 %v396_v49, %v398_v52 }
 0x1ed   :  { %v399_v55 = vmax.f32 %v395_v51, %v397_v53 }
 0x1ee   :  { %v402_v56 = vsel %vm70_vm5, %v400_v54, -1e+30 }
 0x1ef   :  { %v406_v57 = vsel %vm244_vm4, %v402_v56, -inf  ;;  %v401_v58 = vsel %vm69_vm6, %v399_v55, -1e+30 }
 0x1f0   :  { %407 = vmax.xlane.f32.xlu1 %v406_v57  ;;  %v403_v59 = vsel %vm244_vm4, %v401_v58, -inf }
 0x1f1   :  { %404 = vmax.xlane.f32.xlu0 %v403_v59 }
 0x207   :  { %1663 = vrot.lane.b32.xlu0 %v1662_v12, %s1723_s14 }
 0x259   :  { %v268_v60 = vpop.xlane.xlu1 %267  ;;  %v265_v61 = vpop.xlane.xlu0 %264 }
 0x25a   :  { %v270_v62 = vsub.f32 %v262_v42, %v268_v60  ;;  %v269_v63 = vsub.f32 %v261_v43, %v265_v61 }
 0x25c   :  { %v273_v0 = vmul.f32 1.442695, %v270_v62  ;;  %v271_v1 = vmul.f32 1.442695, %v269_v63 }
 0x25e   :  { %1667 = vpow2.f32 %v273_v0 }
 0x25f   :  { %1669 = vpow2.f32 %v271_v1 }
 0x268   :  { %v1668_v2 = vpop.eup %1667 }
 0x269   :  { %v1670_v3 = vpop.eup %1669  ;;  %v278_v21 = vsel %vm244_vm4, %v1668_v2, 0.0 }
 0x26a   :  { %1411 = vmatprep.mubr.msk.f32.mxu0 %vm244_vm4, %v1670_v3  ;;  %v275_v20 = vsel %vm244_vm4, %v1670_v3, 0.0 }
 0x26b   :  { %1412 = vmatmul.mubr.msk.f32.vlgmr.msra.gmra.mrb[2].mxu0 %vm244_vm4, %v1668_v2 }
 0x27d   :  { %v408_v6 = vpop.xlane.xlu1 %407 }
 0x27e   :  { %v410_v9 = vsub.f32 %v402_v56, %v408_v6  ;;  %v405_v10 = vpop.xlane.xlu0 %404  ;;  %v1300_v56 = vld [vmem:[%s2141_s7] ss:$0 sm:$0xff] }
 0x27f   :  { %v409_v11 = vsub.f32 %v401_v58, %v405_v10 }
 0x280   :  { %v413_v7 = vmul.f32 1.442695, %v410_v9 }
 0x281   :  { %v411_v8 = vmul.f32 1.442695, %v409_v11 }
 0x282   :  { %v1664_v12 = vpop.permute.xlu0 %1663 }
 0x283   :  { %1671 = vpow2.f32 %v411_v8  ;;  %v1666_v13 = vunpack.i.h.bf16 %v1664_v12  ;;  %v1665_v14 = vunpack.i.l.bf16 %v1664_v12 }
 0x284   :  { %1673 = vpow2.f32 %v413_v7 }
 0x285   :  { %v1550_v15 = vpack.c.bf16 %v1666_v13, %v1665_v14 }
 0x287   :  { %1551 = vmatprep.subr.bf16.mxu0 %v1550_v15 }
 0x288   :  { %1553 = vmatpush3.bf16.msra.mxu0 %v1550_v15 }
 0x28d   :  { %v1672_v16 = vpop.eup %1671 }
 0x28e   :  { %v1674_v17 = vpop.eup %1673  ;;  %1418 = vmatprep.mubr.msk.f32.mxu0 %vm244_vm4, %v1672_v16  ;;  %v415_v18 = vsel %vm244_vm4, %v1672_v16, 0.0 }
 0x28f   :  { %416 = vadd.xlane.f32.xlu1 %v415_v18  ;;  %1419 = vmatmul.mubr.msk.f32.vlgmr.msra.gmra.mrb[4].mxu0 %vm244_vm4, %v1674_v17  ;;  %v418_v19 = vsel %vm244_vm4, %v1674_v17, 0.0 }
 0x293   :  { %419 = vadd.xlane.f32.xlu1 %v418_v19 }
 0x297   :  { %276 = vadd.xlane.f32.xlu1 %v275_v20 }
 0x29b   :  { %279 = vadd.xlane.f32.xlu1 %v278_v21 }
 0x31c   :  { %v417_v22 = vpop.xlane.xlu1 %416 }
 0x320   :  { %v420_v23 = vpop.xlane.xlu1 %419 }
 0x324   :  { %v277_v25 = vpop.xlane.xlu1 %276 }
 0x328   :  { %v280_v27 = vpop.xlane.xlu1 %279 }
 0x329   :  { %1675 = vrcp.f32 %v280_v27  ;;  %v845_v27 = vld [vmem:[%s2144_s10 + $0x10] sm:$0xff] }
 0x32a   :  { %1677 = vrcp.f32 %v277_v25  ;;  %v844_v25 = vld [vmem:[%s2144_s10 + $0x8] sm:$0xff] }
 0x32b   :  { %1679 = vrcp.f32 %v420_v23  ;;  %v843_v23 = vld [vmem:[%s2144_s10] sm:$0xff] }
 0x32c   :  { %1681 = vrcp.f32 %v417_v22 }
 0x333   :  { %v1676_v28 = vpop.eup %1675 }
 0x334   :  { %v1678_v30 = vpop.eup %1677 }
 0x335   :  { %v1680_v42 = vpop.eup %1679 }
 0x336   :  { %v1682_v44 = vpop.eup %1681 }
 0x33e   :  { %v1413_v29 = vpop.f32.mrb[2].mxu0 }
 0x33f   :  { %v365_v31 = vmul.f32 %v1676_v28, %v1413_v29  ;;  %v353_v32 = vpop.f32.mrb[3].mxu0  ;;  %v1570_v28 = vpack.c.bf16 %v844_v25, %v843_v23  ;;  %v846_v29 = vld [vmem:[%s2144_s10 + $0x18] sm:$0xff]  ;;  %v1063_v23 = vld [vmem:[%s2166_s6] sm:$0xff]  ;;  %v1064_v25 = vld [vmem:[%s2166_s6 + $0x8] sm:$0xff] }
 0x340   :  { %v364_v33 = vmul.f32 %v1678_v30, %v353_v32  ;;  %v1574_v30 = vpack.c.bf16 %v846_v29, %v845_v27  ;;  %v848_v32 = vld [vmem:[%s2144_s10 + $0x28] sm:$0xff]  ;;  %v1155_v29 = vld [vmem:[%s2150_s16] sm:$0xff] }
 0x341   :  { %513 = vst.msk [vmem:[#allocation2 + $0x8] sm:$0xff] %vm244_vm4, %v365_v31  ;;  %v847_v31 = vld [vmem:[%s2144_s10 + $0x20] sm:$0xff]  ;;  %1571 = vmatprep.subr.bf16.mxu0 %v1570_v28 }
 0x342   :  { %512 = vst.msk [vmem:[#allocation2] sm:$0xff] %vm244_vm4, %v364_v33  ;;  %1573 = vmatpush3.bf16.msra.mxu0 %v1570_v28  ;;  %v1578_v33 = vpack.c.bf16 %v848_v32, %v847_v31  ;;  %v1618_v28 = vpack.c.bf16 %v1064_v25, %v1063_v23 }
 0x343   :  { %1575 = vmatprep.subr.bf16.mxu0 %v1574_v30 }
 0x346   :  { %1577 = vmatpush3.bf16.msra.mxu0 %v1574_v30  ;;  %v1156_v30 = vld [vmem:[%s2150_s16 + $0x8] sm:$0xff] }
 0x347   :  { %1579 = vmatprep.subr.bf16.mxu0 %v1578_v33  ;;  %v1622_v31 = vpack.c.bf16 %v1156_v30, %v1155_v29 }
 0x34a   :  { %1581 = vmatpush3.bf16.msra.mxu0 %v1578_v33 }
 0x34b   :  { %1583 = vmatprep.subr.bf16.mxu0 %v1582_v38 }
 0x34e   :  { %1585 = vmatpush3.bf16.msra.mxu0 %v1582_v38 }
 0x34f   :  { %1619 = vmatprep.subr.bf16.mxu0 %v1618_v28 }
 0x362   :  { %v1420_v43 = vpop.f32.mrb[4].mxu0 }
 0x363   :  { %v511_v45 = vmul.f32 %v1680_v42, %v1420_v43  ;;  %v499_v46 = vpop.f32.mrb[5].mxu0  ;;  %v1586_v42 = vpack.c.bf16 %v942_v40, %v941_v39  ;;  %v944_v43 = vld [vmem:[%s2146_s12 + $0x18] sm:$0xff] }
 0x364   :  { %v510_v47 = vmul.f32 %v1682_v44, %v499_v46  ;;  %v1590_v44 = vpack.c.bf16 %v944_v43, %v943_v41  ;;  %v946_v46 = vld [vmem:[%s2146_s12 + $0x28] sm:$0xff]  ;;  %v1158_v43 = vld [vmem:[%s2150_s16 + $0x18] sm:$0xff] }
 0x365   :  { %518 = vrot.lane.b32.xlu0 %v511_v45, %s1719_s3  ;;  %v945_v45 = vld [vmem:[%s2146_s12 + $0x20] sm:$0xff] }
 0x366   :  { %516 = vrot.lane.b32.xlu1 %v510_v47, %s1719_s3  ;;  %v1594_v47 = vpack.c.bf16 %v946_v46, %v945_v45 }
 0x3d7   :  { %v519_v48 = vpop.permute.xlu0 %518 }
 0x3d8   :  { %524 = vst.msk [vmem:[#allocation2 + $0x8] sm:$0xff] %vm522_vm7, %v519_v48  ;;  %v517_v49 = vpop.permute.xlu1 %516  ;;  %v947_v48 = vld [vmem:[%s2146_s12 + $0x30] sm:$0xff] }
 0x3d9   :  { %523 = vst.msk [vmem:[#allocation2] sm:$0xff] %vm522_vm7, %v517_v49  ;;  %v948_v49 = vld [vmem:[%s2146_s12 + $0x38] sm:$0xff] }
 0x3df   :  { %v526_v51 = vld [vmem:[#allocation2 + $0x8] sm:$0xff] }
 0x3e0   :  { %v525_v52 = vld [vmem:[#allocation2] sm:$0xff]  ;;  %v535_v4 = vadd.f32 %v1294_v50, %v526_v51  ;;  %v949_v51 = vld [vmem:[%s2146_s12 + $0x40] sm:$0xff] }
 0x3e1   :  { %v534_v53 = vadd.f32 %v1294_v50, %v525_v52  ;;  %v1598_v50 = vpack.c.bf16 %v948_v49, %v947_v48  ;;  %v950_v52 = vld [vmem:[%s2146_s12 + $0x48] sm:$0xff] }
 0x3e2   :  { %v537_v55 = vmax.f32 %v535_v4, 0.0  ;;  %v1602_v4 = vpack.c.bf16 %v950_v52, %v949_v51  ;;  %v1160_v48 = vld [vmem:[%s2150_s16 + $0x28] sm:$0xff]  ;;  %v1162_v51 = vld [vmem:[%s2150_s16 + $0x38] sm:$0xff] }
 0x3e3   :  { %v536_v54 = vmax.f32 %v534_v53, 0.0  ;;  %v951_v53 = vld [vmem:[%s2146_s12 + $0x50] sm:$0xff] }
 0x3e5   :  { %1429 = vmatprep.mubr.msk.f32.mxu1 %vm157_vm2, %v536_v54  ;;  %v952_v54 = vld [vmem:[%s2146_s12 + $0x58] sm:$0xff] }
 0x3e6   :  { %1430 = vmatmul.mubr.msk.f32.vlgmr.msra.gmra.mrb[2].mxu1 %vm157_vm2, %v537_v55  ;;  %v1606_v55 = vpack.c.bf16 %v952_v54, %v951_v53  ;;  %v1164_v53 = vld [vmem:[%s2150_s16 + $0x48] sm:$0xff] }
 0x3e7   :  { %1436 = vmatprep.mubr.msk.f32.mxu1 %vm1721_vm1, %v1722_v5  ;;  %v623_v5 = vld [vmem:[%s2142_s8] sm:$0x1] }
 0x4b9   :  { %v1431_v57 = vpop.f32.mrb[2].mxu1 }
 0x4ba   :  { %v712_v58 = vmul.f32 %v1431_v57, %v1300_v56  ;;  %v614_v59 = vpop.f32.mrb[3].mxu1 }
 0x4bb   :  { %v1563_v60 = vpack.c.bf16 %v1431_v57, %v614_v59  ;;  %v711_v61 = vmul.f32 %v1300_v56, %v614_v59  ;;  %v953_v56 = vld [vmem:[%s2146_s12 + $0x60] sm:$0xff]  ;;  %v954_v57 = vld [vmem:[%s2146_s12 + $0x68] sm:$0xff] }
 0x4bc   :  { %v716_v62 = vsel %vm624_vm8, %v712_v58, 0.0  ;;  %v1610_v58 = vpack.c.bf16 %v954_v57, %v953_v56  ;;  %v1166_v56 = vld [vmem:[%s2150_s16 + $0x58] sm:$0xff] }
 0x4bd   :  { %717 = vadd.xlane.f32.xlu1 %v716_v62  ;;  %1565 = vmatpush3.bf16.xpose.msk.msra.mxu1 %vm1564_vm9, %v1563_v60  ;;  %v713_v63 = vsel %vm624_vm8, %v711_v61, 0.0 }
 0x4be   :  { %714 = vadd.xlane.f32.xlu0 %v713_v63  ;;  %1567 = vmatprep.subr.bf16.mxu1 %v1563_v60 }
 0x4c4   :  { %1437 = vmatmul.mubr.msk.f32.vlgmr.msra.gmra.mrb[4].mxu1 %vm624_vm8, %v623_v5 }
 0x4c5   :  { %1569 = vmatpush3.bf16.msra.mxu1 %v1563_v60 }
 0x4c6   :  { %1587 = vmatprep.subr.bf16.mxu1 %v1586_v42 }
 0x54a   :  { %v718_v3 = vpop.xlane.xlu1 %717 }
 0x54b   :  { %v715_v6 = vpop.xlane.xlu0 %714 }
 0x597   :  { %v700_v0 = vpop.f32.mrb[4].mxu1 }
 0x598   :  { %v722_v1 = vrot.slane %v700_v0, %v253_v26  ;;  %v1438_v2 = vpop.f32.mrb[5].mxu1  ;;  %v1303_v0 = vld [vmem:[%s2143_s9] ss:$0 sm:$0xff] }
 0x59a   :  { %v723_v9 = vadd.f32 %v722_v1, %v715_v6  ;;  %v724_v10 = vadd.f32 %v722_v1, %v718_v3 }
 0x59c   :  { %v725_v11 = vmul.f32 0.2, %v723_v9  ;;  %v726_v7 = vmul.f32 0.2, %v724_v10 }
 0x59e   :  { %v727_v8 = vmax.f32 %v723_v9, %v725_v11  ;;  %v728_v12 = vmax.f32 %v724_v10, %v726_v7  ;;  %v955_v9 = vld [vmem:[%s2146_s12 + $0x70] sm:$0xff]  ;;  %v956_v10 = vld [vmem:[%s2146_s12 + $0x78] sm:$0xff]  ;;  %v1304_v7 = vld [vmem:[%s2145_s11] ss:$0 sm:$0xff] }
 0x59f   :  { %v1614_v11 = vpack.c.bf16 %v956_v10, %v955_v9 }
 0x5a0   :  { %v729_v13 = vsel %vm69_vm6, %v727_v8, -1e+30  ;;  %v730_v15 = vsel %vm70_vm5, %v728_v12, -1e+30 }
 0x5a1   :  { %v731_v14 = vsel %vm244_vm4, %v729_v13, -inf  ;;  %v734_v24 = vsel %vm244_vm4, %v730_v15, -inf }
 0x5a2   :  { %732 = vmax.xlane.f32.xlu0 %v731_v14 }
 0x5a6   :  { %735 = vmax.xlane.f32.xlu0 %v734_v24 }
 0x62f   :  { %v733_v26 = vpop.xlane.xlu0 %732 }
 0x630   :  { %v737_v16 = vsub.f32 %v729_v13, %v733_v26  ;;  %v1307_v26 = vld [vmem:[%s2147_s13] ss:$0 sm:$0xff] }
 0x632   :  { %v739_v17 = vmul.f32 1.442695, %v737_v16 }
 0x633   :  { %v736_v18 = vpop.xlane.xlu0 %735 }
 0x634   :  { %1683 = vpow2.f32 %v739_v17  ;;  %v738_v19 = vsub.f32 %v730_v15, %v736_v18 }
 0x636   :  { %v741_v20 = vmul.f32 1.442695, %v738_v19 }
 0x638   :  { %1685 = vpow2.f32 %v741_v20 }
 0x63e   :  { %v1684_v21 = vpop.eup %1683 }
 0x63f   :  { %1443 = vmatprep.mubr.msk.f32.mxu1 %vm244_vm4, %v1684_v21  ;;  %v743_v35 = vsel %vm244_vm4, %v1684_v21, 0.0 }
 0x640   :  { %744 = vadd.xlane.f32.xlu0 %v743_v35 }
 0x642   :  { %v1686_v22 = vpop.eup %1685 }
 0x643   :  { %1444 = vmatmul.mubr.msk.f32.vlgmr.msra.gmra.mrb[6].mxu1 %vm244_vm4, %v1686_v22  ;;  %v746_v34 = vsel %vm244_vm4, %v1686_v22, 0.0 }
 0x644   :  { %747 = vadd.xlane.f32.xlu0 %v746_v34  ;;  %1589 = vmatpush3.bf16.msra.mxu1 %v1586_v42  ;;  %v1157_v42 = vld [vmem:[%s2150_s16 + $0x10] sm:$0xff] }
 0x645   :  { %1591 = vmatprep.subr.bf16.mxu1 %v1590_v44  ;;  %v1626_v46 = vpack.c.bf16 %v1158_v43, %v1157_v42 }
 0x648   :  { %1593 = vmatpush3.bf16.msra.mxu1 %v1590_v44 }
 0x649   :  { %1595 = vmatprep.subr.bf16.mxu1 %v1594_v47 }
 0x64c   :  { %1597 = vmatpush3.bf16.msra.mxu1 %v1594_v47  ;;  %v1159_v47 = vld [vmem:[%s2150_s16 + $0x20] sm:$0xff] }
 0x64d   :  { %1599 = vmatprep.subr.bf16.mxu1 %v1598_v50  ;;  %v1630_v49 = vpack.c.bf16 %v1160_v48, %v1159_v47 }
 0x650   :  { %1601 = vmatpush3.bf16.msra.mxu1 %v1598_v50  ;;  %v1161_v50 = vld [vmem:[%s2150_s16 + $0x30] sm:$0xff] }
 0x651   :  { %1603 = vmatprep.subr.bf16.mxu1 %v1602_v4  ;;  %v1634_v52 = vpack.c.bf16 %v1162_v51, %v1161_v50 }
 0x654   :  { %1605 = vmatpush3.bf16.msra.mxu1 %v1602_v4  ;;  %v1163_v4 = vld [vmem:[%s2150_s16 + $0x40] sm:$0xff] }
 0x655   :  { %1607 = vmatprep.subr.bf16.mxu1 %v1606_v55  ;;  %v1638_v54 = vpack.c.bf16 %v1164_v53, %v1163_v4 }
 0x658   :  { %1609 = vmatpush3.bf16.msra.mxu1 %v1606_v55  ;;  %v1165_v55 = vld [vmem:[%s2150_s16 + $0x50] sm:$0xff] }
 0x659   :  { %1611 = vmatprep.subr.bf16.mxu1 %v1610_v58  ;;  %v1642_v57 = vpack.c.bf16 %v1166_v56, %v1165_v55 }
 0x65c   :  { %1613 = vmatpush3.bf16.msra.mxu1 %v1610_v58  ;;  %v1167_v58 = vld [vmem:[%s2150_s16 + $0x60] sm:$0xff] }
 0x65d   :  { %1615 = vmatprep.subr.bf16.mxu1 %v1614_v11 }
 0x660   :  { %1617 = vmatpush3.bf16.msra.mxu1 %v1614_v11 }
 0x6cd   :  { %v745_v59 = vpop.xlane.xlu0 %744 }
 0x6d1   :  { %v748_v60 = vpop.xlane.xlu0 %747 }
 0x6d2   :  { %1687 = vrcp.f32 %v748_v60 }
 0x6d3   :  { %1689 = vrcp.f32 %v745_v59  ;;  %v1168_v59 = vld [vmem:[%s2150_s16 + $0x68] sm:$0xff] }
 0x6d4   :  { %v1646_v60 = vpack.c.bf16 %v1168_v59, %v1167_v58 }
 0x6dc   :  { %v1688_v61 = vpop.eup %1687 }
 0x6dd   :  { %v1690_v63 = vpop.eup %1689 }
 0x716   :  { %v1445_v62 = vpop.f32.mrb[6].mxu1 }
 0x717   :  { %v833_v5 = vmul.f32 %v1688_v61, %v1445_v62  ;;  %v821_v1 = vpop.f32.mrb[7].mxu1  ;;  %v1169_v61 = vld [vmem:[%s2150_s16 + $0x70] sm:$0xff]  ;;  %v1170_v62 = vld [vmem:[%s2150_s16 + $0x78] sm:$0xff]  ;;  %s1724_s16 = smov 64  }
 0x718   :  { %v832_v2 = vmul.f32 %v1690_v63, %v821_v1  ;;  %v1650_v63 = vpack.c.bf16 %v1170_v62, %v1169_v61 }
 0x719   :  { %v2027_v6 = vadd.f32 %v1303_v0, %v833_v5  ;;  %v1310_v5 = vld [vmem:[%s2149_s15] ss:$0 sm:$0xff]  ;;  %s1725_s15 = smov [#allocation3]  }
 0x71a   :  { %v2025_v3 = vadd.f32 %v1303_v0, %v832_v2  ;;  %s1272_s18 = sshll.u32 %s1725_s15, 4  ;;  %s1273_s18 = int_to_ptr.vmem [resolvable:$true] %s1272_s18 }
 0x71b   :  { %p1700_p1 = scmp.lt.s32.totalorder %s1273_s18, %s1273_s18 }
 0x71c   :  { %1462 = vmatprep.mubr.msk.f32.mxu0 %vm624_vm8, %v2025_v3 }
 0x71d   :  { %1463 = vmatmul.mubr.msk.f32.vlgmr.msra.gmra.mrb[6].mxu0 %vm624_vm8, %v2027_v6 }
 0x71e   :  { %1621 = vmatpush3.bf16.msra.mxu0 %v1618_v28 }
 0x71f   :  { %1623 = vmatprep.subr.bf16.mxu0 %v1622_v31 }
 0x7f0   :  { %v1464_v8 = vpop.f32.mrb[6].mxu0 }
 0x7f1   :  { %v936_v12 = vadd.f32 %v1464_v8, %v1304_v7  ;;  %v930_v13 = vpop.f32.mrb[7].mxu0 }
 0x7f2   :  { %v931_v14 = vadd.f32 %v1304_v7, %v930_v13  ;;  %v1313_v7 = vld [vmem:[%s2151_s17] ss:$0 sm:$0xff]  ;;  %s1695_s17 = scalar_lea.vmem %s1273_s18, 512 }
 0x7f3   :  { %v940_v24 = vmax.f32 %v936_v12, 0.0  ;;  %p1696_p0 = scmp.ne.s32.totalorder %s1273_s18, %s1695_s17  ;;  %p1701_p2 = scmp.lt.s32.totalorder %s1695_s17, %s1695_s17 }
 0x7f4   :  { %v939_v15 = vmax.f32 %v931_v14, 0.0 }
 0x7f5   :  { %p1702_p3 = por %p1701_p2, %p1700_p1 }
 0x7f6   :  { %1497 = vmatprep.mubr.f32.mxu1 %v939_v15 }
 0x7f7   :  { %1498 = vmatmul.mubr.f32.vlgmr.msra.gmra.mrb[8].mxu1 %v940_v24  ;;  %p1703_p4 = pnand %p1702_p3, %p1696_p0 }
 0x8ca   :  { %v1499_v16 = vpop.f32.mrb[8].mxu1 }
 0x8cb   :  { %v1036_v17 = vadd.f32 %v1499_v16, %v1307_v26  ;;  %v1030_v18 = vpop.f32.mrb[9].mxu1 }
 0x8cc   :  { %v1031_v19 = vadd.f32 %v1307_v26, %v1030_v18 }
 0x8cd   :  { %v1309_v20 = vclamps-f32 %v1036_v17, 10.0  ;;  %1266 = vst.msk [vmem:[#allocation3 + $0x18] sm:$0xff] %vm157_vm2, %v1036_v17 }
 0x8ce   :  { %v1308_v21 = vclamps-f32 %v1031_v19, 10.0  ;;  %1264 = vst.msk [vmem:[#allocation3 + $0x8] sm:$0xff] %vm157_vm2, %v1031_v19 }
 0x8cf   :  { %v1044_v35 = vmul.f32 0.5, %v1309_v20 }
 0x8d0   :  { %v1043_v22 = vmul.f32 0.5, %v1308_v21 }
 0x8d1   :  { %v1047_v34 = vmul.f32 1.442695, %v1044_v35 }
 0x8d2   :  { %v1045_v27 = vmul.f32 1.442695, %v1043_v22 }
 0x8d3   :  { %1691 = vpow2.f32 %v1047_v34 }
 0x8d4   :  { %1693 = vpow2.f32 %v1045_v27 }
 0x8dd   :  { %v1692_v32 = vpop.eup %1691 }
 0x8de   :  { %v1694_v33 = vpop.eup %1693  ;;  %1055 = vrot.lane.b32.xlu0 %v1692_v32, %s1723_s14 }
 0x8df   :  { %1053 = vrot.lane.b32.xlu1 %v1694_v33, %s1723_s14 }
 0x950   :  { %v1056_v38 = vpop.permute.xlu0 %1055 }
 0x951   :  { %v1060_v39 = vmul.f32 %v1056_v38, %v1050_v36  ;;  %v1054_v40 = vpop.permute.xlu1 %1053 }
 0x952   :  { %v1059_v41 = vmul.f32 %v1054_v40, %v1049_v37 }
 0x953   :  { %v1062_v45 = vadd.f32 %v1060_v39, %v1036_v17 }
 0x954   :  { %v1061_v44 = vadd.f32 %v1059_v41, %v1031_v19 }
 0x956   :  { %1504 = vmatprep.mubr.msk.f32.mxu0 %vm244_vm4, %v1061_v44 }
 0x957   :  { %1505 = vmatmul.mubr.msk.f32.vlgmr.msra.gmra.mrb[8].mxu0 %vm244_vm4, %v1062_v45 }
 0x958   :  { %1625 = vmatpush3.bf16.msra.mxu0 %v1622_v31 }
 0x959   :  { %1627 = vmatprep.subr.bf16.mxu0 %v1626_v46 }
 0x95c   :  { %1629 = vmatpush3.bf16.msra.mxu0 %v1626_v46 }
 0x95d   :  { %1631 = vmatprep.subr.bf16.mxu0 %v1630_v49 }
 0x960   :  { %1633 = vmatpush3.bf16.msra.mxu0 %v1630_v49 }
 0x961   :  { %1635 = vmatprep.subr.bf16.mxu0 %v1634_v52 }
 0x964   :  { %1637 = vmatpush3.bf16.msra.mxu0 %v1634_v52 }
 0x965   :  { %1639 = vmatprep.subr.bf16.mxu0 %v1638_v54 }
 0x968   :  { %1641 = vmatpush3.bf16.msra.mxu0 %v1638_v54 }
 0x969   :  { %1643 = vmatprep.subr.bf16.mxu0 %v1642_v57 }
 0x96c   :  { %1645 = vmatpush3.bf16.msra.mxu0 %v1642_v57 }
 0x96d   :  { %1647 = vmatprep.subr.bf16.mxu0 %v1646_v60 }
 0x970   :  { %1649 = vmatpush3.bf16.msra.mxu0 %v1646_v60 }
 0x971   :  { %1651 = vmatprep.subr.bf16.mxu0 %v1650_v63 }
 0x974   :  { %1653 = vmatpush3.bf16.msra.mxu0 %v1650_v63 }
 0xa2a   :  { %v1506_v0 = vpop.f32.mrb[8].mxu0 }
 0xa2b   :  { %v1150_v1 = vadd.f32 %v1506_v0, %v1310_v5  ;;  %v1144_v2 = vpop.f32.mrb[9].mxu0 }
 0xa2c   :  { %v1145_v9 = vadd.f32 %v1310_v5, %v1144_v2 }
 0xa2d   :  { %v1154_v11 = vmax.f32 %v1150_v1, 0.0 }
 0xa2e   :  { %v1153_v10 = vmax.f32 %v1145_v9, 0.0 }
 0xa30   :  { %1539 = vmatprep.mubr.f32.mxu0 %v1153_v10 }
 0xa31   :  { %1540 = vmatmul.mubr.f32.vlgmr.msra.gmra.mrb[10].mxu0 %v1154_v11 }
 0xb04   :  { %v1541_v8 = vpop.f32.mrb[10].mxu0 }
 0xb05   :  { %v1244_v12 = vpop.f32.mrb[11].mxu0  ;;  %v1250_v14 = vadd.f32 %v1541_v8, %v1313_v7 }
 0xb06   :  { %v1245_v13 = vadd.f32 %v1313_v7, %v1244_v12 }
 0xb08   :  { %1255 = vrot.lane.b32.xlu1 %v1245_v13, %s1724_s16 }
 0xb0c   :  { %1257 = vrot.lane.b32.xlu1 %v1250_v14, %s1724_s16 }
 0xb7a   :  { %v1256_v15 = vpop.permute.xlu1 %1255 }
 0xb7b   :  { %v1261_v24 = vsel %vm624_vm8, %v2025_v3, %v1256_v15 }
 0xb7c   :  { %1263 = vst [vmem:[#allocation3] sm:$0xff] %v1261_v24 }
 0xb7e   :  { %v1258_v26 = vpop.permute.xlu1 %1257 }
 0xb7f   :  { %v1262_v16 = vsel %vm624_vm8, %v2027_v6, %v1258_v26 }
 0xb80   :  { %1265 = vst [vmem:[#allocation3 + $0x10] sm:$0xff] %v1262_v16 }
 0xb81   :  { %1706 = shalt.err (!%p1703_p4)
}
 0xb82   :  { %s1707_s9 = scalar_lea.hbm %s2153_s19, 512 }
 0xb83   :  { %p1708_p5 = scmp.ne.s32.totalorder %s2153_s19, %s1707_s9  ;;  %p1711_p6 = scmp.lt.u32.totalorder %s1707_s9, %s2153_s19 }
 0xb85   :  { %p1713_p7 = pnand %p1711_p6, %p1708_p5 }
 0xb87   :  { %1716 = shalt.err (!%p1713_p7)
}
 0xb88   :  { %s1726_s12 = smov 256  }
 0xb89   :  { %1278 = dma.vmem_to_hbm [thread:$0]  %s1273_s18, 512, %s2153_s19, [#allocation4], %s1726_s12, %s1726_s12, %s1719_s3  }
 0xb8a   :  { %1717 = dma.done.wait [#allocation4], 512  }
 0xb8b   :  { %1718 = vsyncadd [#allocation4], 4294966784 }
 0xb8c   :  { %1282 = vsyncpa [#allocation4], 1 }

</bundles_post_ra>
